<compile_context>
chip_gen: v7x
topology: tpu7x:2x2x1
jax: 0.10.0
libtpu: 0.0.40
codegen_flags: <defaults>
</compile_context>

<pallas_src>
import math

import jax
import jax.numpy as jnp
import numpy as np
from jax import lax
from jax.experimental import pallas as pl
from jax.experimental.pallas import tpu as pltpu

PI = math.pi
ALPHA_SCALE = 0.5


def _get_biquad_coefficients_lowpass(cos_w0, alpha):
    # Concrete instantiation of the abstract get_biquad_coefficients
    # (RBJ cookbook low-pass, as in grafx's LowPassFilter subclass).
    b0 = (1.0 - cos_w0) * 0.5
    b1 = 1.0 - cos_w0
    b2 = b0
    a0 = 1.0 + alpha
    a1 = -2.0 * cos_w0
    a2 = 1.0 - alpha
    Bs = jnp.concatenate([b0, b1, b2], axis=-1)  # (B, 3)
    As = jnp.concatenate([a0, a1, a2], axis=-1)  # (B, 3)
    return Bs, As


def _block_responses(b_coef, a_coef, block):
    """Length-`block` responses of the a0-normalized biquad, per batch filter.

    Returns:
      h: (B, block)     impulse response (zero initial state)
      g: (B, 4, block)  zero-input responses to unit boundary conditions
                        [x[-1], x[-2], y[-1], y[-2]]
    One-time O(block) wrapper cost, independent of L.
    """
    Bn = b_coef.shape[0]
    b0 = b_coef[:, 0:1]
    b1 = b_coef[:, 1:2]
    b2 = b_coef[:, 2:3]
    a1 = a_coef[:, 1:2]
    a2 = a_coef[:, 2:3]

    # 5 virtual channels per batch: [impulse, x[-1]=1, x[-2]=1, y[-1]=1, y[-2]=1]
    eye5 = jnp.eye(5, dtype=jnp.float32)
    x1c = jnp.broadcast_to(eye5[1], (Bn, 5))
    x2c = jnp.broadcast_to(eye5[2], (Bn, 5))
    y1c = jnp.broadcast_to(eye5[3], (Bn, 5))
    y2c = jnp.broadcast_to(eye5[4], (Bn, 5))
    xs = jnp.zeros((block, Bn, 5), jnp.float32).at[0, :, 0].set(1.0)

    def step(carry, xt):
        x1, x2, y1, y2 = carry
        yt = b0 * xt + b1 * x1 + b2 * x2 - a1 * y1 - a2 * y2
        return (xt, x1, yt, y1), yt

    _, ys = lax.scan(step, (x1c, x2c, y1c, y2c), xs)   # (block, B, 5)
    h = jnp.transpose(ys[:, :, 0])                     # (B, block)
    g = jnp.transpose(ys[:, :, 1:], (1, 2, 0))         # (B, 4, block)
    return h, g


def _toeplitz_upper(h):
    """h: (B, T) -> Ht: (B, T, T) with Ht[b, k, n] = h[b, n - k] for n >= k."""
    T = h.shape[-1]
    idx = jnp.arange(T)[None, :] - jnp.arange(T)[:, None]   # (T, T) = n - k
    return jnp.where(idx >= 0, h[:, jnp.clip(idx, 0, T - 1)], 0.0)


def _biquad_block_kernel(ht_ref, g_ref, x_ref, y_ref, state_ref):
    """One (batch, time-block) grid cell.

    ht_ref:    (T, T)   upper-triangular Toeplitz of the impulse response
    g_ref:     (4, T)   boundary-condition (zero-input) responses
    x_ref:     (C, T)   input block in the native (B, C, L) layout
    y_ref:     (C, T)   output block
    state_ref: (Ck, 4)  carried state columns [x[-1], x[-2], y[-1], y[-2]]
    """
    # Zero initial conditions at the start of each batch's time sweep.
    @pl.when(pl.program_id(1) == 0)
    def _():
        state_ref[...] = jnp.zeros_like(state_ref)

    x_blk = x_ref[...]
    C, T = x_blk.shape
    Ck = state_ref.shape[0]
    if Ck != C:   # pad the sublane (channel) dim up to a full 8-row tile
        x_blk = jnp.concatenate(
            [x_blk, jnp.zeros((Ck - C, T), x_blk.dtype)], axis=0)

    # In-block convolution on the MXU (f32-accurate passes).
    y = jnp.dot(x_blk, ht_ref[...],
                precision=lax.Precision.HIGHEST,
                preferred_element_type=jnp.float32)

    # Carry-in from the previous block: 4 rank-1 updates on the VPU.
    st = state_ref[...]
    g = g_ref[...]
    y = (y
         + st[:, 0:1] * g[0:1, :]
         + st[:, 1:2] * g[1:2, :]
         + st[:, 2:3] * g[2:3, :]
         + st[:, 3:4] * g[3:4, :])

    y_ref[...] = y[:C].astype(y_ref.dtype)

    # Carry-out: the last two inputs / outputs of this block.
    state_ref[...] = jnp.concatenate(
        [x_blk[:, T - 1:T], x_blk[:, T - 2:T - 1],
         y[:, T - 1:T], y[:, T - 2:T - 1]], axis=1)


def parametric_filter(input_signals, w0, q_inv, block_size=128):
    """input_signals: (B, C, L) f32, w0: (B, 1), q_inv: (B, 1) -> (B, C, L)."""
    assert block_size % 128 == 0, "block_size must be a multiple of 128"
    B, C, L = input_signals.shape

    # --- parameter activations & biquad coefficients (cheap glue) ---
    w0_a = PI * jax.nn.sigmoid(w0)
    q = jnp.exp(q_inv)
    cos_w0 = jnp.cos(w0_a)
    alpha = jnp.sin(w0_a) * q * ALPHA_SCALE
    Bs, As = _get_biquad_coefficients_lowpass(cos_w0, alpha)   # (B, 3) each

    # Pre-normalize by a0 so the recursion needs no divide / reciprocal.
    a0 = As[:, 0:1]
    b_n = (Bs / a0).astype(jnp.float32)
    a_n = (As / a0).astype(jnp.float32)

    # --- block size along L (128 lanes; use 256 on v6e/v7x if desired) ---
    if L >= block_size:
        T = block_size
    else:
        T = max(8, -(-L // 8) * 8)          # single block, sublane-rounded
    Lp = -(-L // T) * T
    nb = Lp // T

    x = input_signals.astype(jnp.float32)
    if Lp != L:
        x = jnp.pad(x, ((0, 0), (0, 0), (0, Lp - L)))   # zero-pad tail, crop later

    # --- per-batch block-recurrence operators (O(T), independent of L) ---
    h, g = _block_responses(b_n, a_n, T)    # (B, T), (B, 4, T)
    ht = _toeplitz_upper(h)                 # (B, T, T)

    Ck = C if C >= 8 else 8                 # sublane-padded channel rows

    y = pl.pallas_call(
        _biquad_block_kernel,
        out_shape=jax.ShapeDtypeStruct((B, C, Lp), jnp.float32),
        grid=(B, nb),
        in_specs=[
            pl.BlockSpec((None, T, T), lambda b, t: (b, 0, 0)),
            pl.BlockSpec((None, 4, T), lambda b, t: (b, 0, 0)),
            pl.BlockSpec((None, C, T), lambda b, t: (b, 0, t)),
        ],
        out_specs=pl.BlockSpec((None, C, T), lambda b, t: (b, 0, t)),
        scratch_shapes=[pltpu.VMEM((Ck, 4), jnp.float32)],
        compiler_params=pltpu.CompilerParams(
            dimension_semantics=("parallel", "arbitrary")),
    )(ht, g, x)

    if Lp != L:
        y = y[:, :, :L]
    return y


def _reference(input_signals, w0, q_inv):
    """Pure-JAX reference (same math, lax.scan recursion) for validation."""
    B, C, L = input_signals.shape
    w0_a = PI * jax.nn.sigmoid(w0)
    q = jnp.exp(q_inv)
    cos_w0 = jnp.cos(w0_a)
    alpha = jnp.sin(w0_a) * q * ALPHA_SCALE
    Bs, As = _get_biquad_coefficients_lowpass(cos_w0, alpha)
    b = (Bs / As[:, :1])[:, None, :]   # (B, 1, 3) normalized
    a = (As / As[:, :1])[:, None, :]

    def step(carry, xt):
        x1, x2, y1, y2 = carry
        yt = (b[..., 0] * xt + b[..., 1] * x1 + b[..., 2] * x2
              - a[..., 1] * y1 - a[..., 2] * y2)
        return (xt, x1, yt, y1), yt

    z = jnp.zeros((B, C), dtype=jnp.float32)
    xs = jnp.moveaxis(input_signals, -1, 0)   # (L, B, C)
    _, ys = lax.scan(step, (z, z, z, z), xs)
    return jnp.moveaxis(ys, 0, -1)            # (B, C, L)


if __name__ == "__main__":
    key = jax.random.PRNGKey(0)

    # Two small configs: single-block, and multi-block with a ragged tail
    # (exercises the carried state and the L padding/crop path).
    for (B, C, L) in [(2, 4, 64), (2, 3, 328)]:
        k1, k2, k3, key = jax.random.split(key, 4)
        x = jax.random.normal(k1, (B, C, L), dtype=jnp.float32)
        w0 = jax.random.normal(k2, (B, 1), dtype=jnp.float32)
        q_inv = jax.random.normal(k3, (B, 1), dtype=jnp.float32)

        y = jax.block_until_ready(parametric_filter(x, w0, q_inv))
        y_ref = jax.block_until_ready(_reference(x, w0, q_inv))
        np.testing.assert_allclose(np.asarray(y), np.asarray(y_ref),
                                   rtol=5e-4, atol=5e-4)

    print("KERNEL_OK")
</pallas_src>

<mosaic_0001>
module attributes {stable_mosaic.version = 11 : i64} {
  func.func @_biquad_block_kernel(%arg0: i32, %arg1: i32, %arg2: memref<1x64x64xf32, #tpu.memory_space<vmem>>, %arg3: memref<1x4x64xf32, #tpu.memory_space<vmem>>, %arg4: memref<1x4x64xf32, #tpu.memory_space<vmem>>, %arg5: memref<1x4x64xf32, #tpu.memory_space<vmem>>, %arg6: memref<8x4xf32, #tpu.memory_space<vmem>>) attributes {dimension_semantics = [#tpu.dimension_semantics<parallel>, #tpu.dimension_semantics<arbitrary>], iteration_bounds = array<i64: 2, 1>, scalar_prefetch = 0 : i64, scratch_operands = 1 : i64, tpu.core_type = #tpu.core_type<tc>, window_params = [{transform_indices = @transform_0, window_bounds = array<i64: 1, 64, 64>}, {transform_indices = @transform_1, window_bounds = array<i64: 1, 4, 64>}, {transform_indices = @transform_2, window_bounds = array<i64: 1, 4, 64>}, {transform_indices = @transform_3, window_bounds = array<i64: 1, 4, 64>}]} {
    %c0_i32 = arith.constant 0 : i32
    %0 = arith.cmpi eq, %arg1, %c0_i32 : i32
    %1 = arith.extui %0 : i1 to i32
    %c0_i32_0 = arith.constant 0 : i32
    %2 = arith.cmpi ne, %1, %c0_i32_0 : i32
    scf.if %2 {
      %cst_17 = arith.constant 0.000000e+00 : f32
      %47 = vector.broadcast %cst_17 : f32 to vector<8x4xf32>
      %c0_18 = arith.constant 0 : index
      %c0_19 = arith.constant 0 : index
      %48 = vector.load %arg6[%c0_18, %c0_19] : memref<8x4xf32, #tpu.memory_space<vmem>>, vector<8x4xf32>
      tpu.vector_store %arg6[%c0_18, %c0_19], %47 {strides = array<i32>} : memref<8x4xf32, #tpu.memory_space<vmem>>, vector<8x4xf32>,
    } else {
    }
    %c0 = arith.constant 0 : index
    %c0_1 = arith.constant 0 : index
    %c0_2 = arith.constant 0 : index
    %3 = vector.load %arg4[%c0, %c0_1, %c0_2] : memref<1x4x64xf32, #tpu.memory_space<vmem>>, vector<1x4x64xf32>
    %4 = vector.shape_cast %3 : vector<1x4x64xf32> to vector<4x64xf32>
    %cst = arith.constant 0.000000e+00 : f32
    %5 = vector.broadcast %cst : f32 to vector<4x64xf32>
    %6 = tpu.concatenate %4, %5 in 0 : vector<4x64xf32>, vector<4x64xf32> -> vector<8x64xf32>
    %c0_3 = arith.constant 0 : index
    %c0_4 = arith.constant 0 : index
    %c0_5 = arith.constant 0 : index
    %7 = vector.load %arg2[%c0_3, %c0_4, %c0_5] : memref<1x64x64xf32, #tpu.memory_space<vmem>>, vector<1x64x64xf32>
    %8 = vector.shape_cast %7 : vector<1x64x64xf32> to vector<64x64xf32>
    %cst_6 = arith.constant dense<0.000000e+00> : vector<8x64xf32>
    %9 = tpu.matmul %6, %8, %cst_6 {dimension_numbers = #tpu.dot_dimension_numbers<[1], [0], [0], [1], [0, 0, 1, 1], [], []>, precision = #tpu.contract_precision<fp32>} : vector<8x64xf32>, vector<64x64xf32>, vector<8x64xf32> -> vector<8x64xf32>
    %c0_7 = arith.constant 0 : index
    %c0_8 = arith.constant 0 : index
    %10 = vector.load %arg6[%c0_7, %c0_8] : memref<8x4xf32, #tpu.memory_space<vmem>>, vector<8x4xf32>
    %c0_9 = arith.constant 0 : index
    %c0_10 = arith.constant 0 : index
    %c0_11 = arith.constant 0 : index
    %11 = vector.load %arg3[%c0_9, %c0_10, %c0_11] : memref<1x4x64xf32, #tpu.memory_space<vmem>>, vector<1x4x64xf32>
    %12 = vector.shape_cast %11 : vector<1x4x64xf32> to vector<4x64xf32>
    %13 = vector.extract_strided_slice %10 {offsets = [0, 0], sizes = [8, 1], strides = [1, 1]} : vector<8x4xf32> to vector<8x1xf32>
    %14 = vector.extract_strided_slice %12 {offsets = [0, 0], sizes = [1, 64], strides = [1, 1]} : vector<4x64xf32> to vector<1x64xf32>
    %15 = vector.broadcast %13 : vector<8x1xf32> to vector<8x64xf32>
    %16 = vector.broadcast %14 : vector<1x64xf32> to vector<8x64xf32>
    %17 = arith.mulf %15, %16 : vector<8x64xf32>
    %18 = arith.addf %9, %17 : vector<8x64xf32>
    %19 = vector.extract_strided_slice %10 {offsets = [0, 1], sizes = [8, 1], strides = [1, 1]} : vector<8x4xf32> to vector<8x1xf32>
    %20 = vector.extract_strided_slice %12 {offsets = [1, 0], sizes = [1, 64], strides = [1, 1]} : vector<4x64xf32> to vector<1x64xf32>
    %21 = vector.broadcast %19 : vector<8x1xf32> to vector<8x64xf32>
    %22 = vector.broadcast %20 : vector<1x64xf32> to vector<8x64xf32>
    %23 = arith.mulf %21, %22 : vector<8x64xf32>
    %24 = arith.addf %18, %23 : vector<8x64xf32>
    %25 = vector.extract_strided_slice %10 {offsets = [0, 2], sizes = [8, 1], strides = [1, 1]} : vector<8x4xf32> to vector<8x1xf32>
    %26 = vector.extract_strided_slice %12 {offsets = [2, 0], sizes = [1, 64], strides = [1, 1]} : vector<4x64xf32> to vector<1x64xf32>
    %27 = vector.broadcast %25 : vector<8x1xf32> to vector<8x64xf32>
    %28 = vector.broadcast %26 : vector<1x64xf32> to vector<8x64xf32>
    %29 = arith.mulf %27, %28 : vector<8x64xf32>
    %30 = arith.addf %24, %29 : vector<8x64xf32>
    %31 = vector.extract_strided_slice %10 {offsets = [0, 3], sizes = [8, 1], strides = [1, 1]} : vector<8x4xf32> to vector<8x1xf32>
    %32 = vector.extract_strided_slice %12 {offsets = [3, 0], sizes = [1, 64], strides = [1, 1]} : vector<4x64xf32> to vector<1x64xf32>
    %33 = vector.broadcast %31 : vector<8x1xf32> to vector<8x64xf32>
    %34 = vector.broadcast %32 : vector<1x64xf32> to vector<8x64xf32>
    %35 = arith.mulf %33, %34 : vector<8x64xf32>
    %36 = arith.addf %30, %35 : vector<8x64xf32>
    %37 = vector.extract_strided_slice %36 {offsets = [0, 0], sizes = [4, 64], strides = [1, 1]} : vector<8x64xf32> to vector<4x64xf32>
    %c0_12 = arith.constant 0 : index
    %c0_13 = arith.constant 0 : index
    %c0_14 = arith.constant 0 : index
    %38 = vector.load %arg5[%c0_12, %c0_13, %c0_14] : memref<1x4x64xf32, #tpu.memory_space<vmem>>, vector<1x4x64xf32>
    %39 = vector.shape_cast %38 : vector<1x4x64xf32> to vector<4x64xf32>
    %40 = vector.shape_cast %37 : vector<4x64xf32> to vector<1x4x64xf32>
    tpu.vector_store %arg5[%c0_12, %c0_13, %c0_14], %40 {strides = array<i32>} : memref<1x4x64xf32, #tpu.memory_space<vmem>>, vector<1x4x64xf32>,
    %41 = vector.extract_strided_slice %6 {offsets = [0, 63], sizes = [8, 1], strides = [1, 1]} : vector<8x64xf32> to vector<8x1xf32>
    %42 = vector.extract_strided_slice %6 {offsets = [0, 62], sizes = [8, 1], strides = [1, 1]} : vector<8x64xf32> to vector<8x1xf32>
    %43 = vector.extract_strided_slice %36 {offsets = [0, 63], sizes = [8, 1], strides = [1, 1]} : vector<8x64xf32> to vector<8x1xf32>
    %44 = vector.extract_strided_slice %36 {offsets = [0, 62], sizes = [8, 1], strides = [1, 1]} : vector<8x64xf32> to vector<8x1xf32>
    %45 = tpu.concatenate %41, %42, %43, %44 in 1 : vector<8x1xf32>, vector<8x1xf32>, vector<8x1xf32>, vector<8x1xf32> -> vector<8x4xf32>
    %c0_15 = arith.constant 0 : index
    %c0_16 = arith.constant 0 : index
    %46 = vector.load %arg6[%c0_15, %c0_16] : memref<8x4xf32, #tpu.memory_space<vmem>>, vector<8x4xf32>
    tpu.vector_store %arg6[%c0_15, %c0_16], %45 {strides = array<i32>} : memref<8x4xf32, #tpu.memory_space<vmem>>, vector<8x4xf32>,
    return
  }
  func.func @transform_0(%arg0: i32, %arg1: i32) -> (i32, i32, i32) {
    %c0_i32 = arith.constant 0 : i32
    %c0_i32_0 = arith.constant 0 : i32
    %c0_i32_1 = arith.constant 0 : i32
    return %arg0, %c0_i32, %c0_i32_0 : i32, i32, i32
  }
  func.func @transform_1(%arg0: i32, %arg1: i32) -> (i32, i32, i32) {
    %c0_i32 = arith.constant 0 : i32
    %c0_i32_0 = arith.constant 0 : i32
    %c0_i32_1 = arith.constant 0 : i32
    return %arg0, %c0_i32, %c0_i32_0 : i32, i32, i32
  }
  func.func @transform_2(%arg0: i32, %arg1: i32) -> (i32, i32, i32) {
    %c0_i32 = arith.constant 0 : i32
    %c0_i32_0 = arith.constant 0 : i32
    return %arg0, %c0_i32, %arg1 : i32, i32, i32
  }
  func.func @transform_3(%arg0: i32, %arg1: i32) -> (i32, i32, i32) {
    %c0_i32 = arith.constant 0 : i32
    %c0_i32_0 = arith.constant 0 : i32
    return %arg0, %c0_i32, %arg1 : i32, i32, i32
  }
}

</mosaic_0001>

<bundles_post_ra>
// kernel: tpu_custom_call.1
= control target key start
LH: loop header
LB: loop body
LE: loop exit
PB: predicated region body
PF: predicated region fallthrough
CT: control target
= control target key end

     0   :  { %s2019_s0 = inlined_call_operand.hbm [shape: f32[2,64,64], index: 0, kind: input, shape index: {}]   ;;  %s2020_s1 = inlined_call_operand.hbm [shape: f32[2,4,64], index: 1, kind: input, shape index: {}]   ;;  %s2021_s2 = inlined_call_operand.hbm [shape: f32[2,4,64], index: 2, kind: input, shape index: {}]   ;;  %s2022_s3 = inlined_call_operand.hbm [shape: f32[2,4,64], index: 3, kind: output, shape index: {}]  }
   0x1   :  { %2029 = sst [smem:[#allocation16_spill]] %s2019_s0 }
   0x2   :  { %2030 = sst [smem:[#allocation17_spill]] %s2020_s1 }
   0x3   :  { %8 = vsyncpa [#allocation4], 0 }
   0x4   :  { %10 = vsyncpa [#allocation4 + $0x1], 0 }
   0x5   :  { %11 = vsyncpa [#allocation7], 0 }
   0x6   :  { %13 = vsyncpa [#allocation7 + $0x1], 0 }
   0x7   :  { %14 = vsyncpa [#allocation5], 0 }
   0x8   :  { %16 = vsyncpa [#allocation5 + $0x1], 0  ;;  %s1602_s12 = smov 0   ;;  %s1604_s13 = smov 0  }
   0x9   :  { %s1606_s14 = smov 0   ;;  %s1608_s15 = smov 0  }
   0xa   :  { %s1610_s16 = smov 0   ;;  %s1612_s17 = smov 0  }
   0xb LB: > { %2031 = sst [smem:[#allocation13_spill]] %s1560_s16  ;;  %s1633_s18 = sadd.s32 4294967295, %s1564_s17   ;;  %s1564_s17 = sphi %s1612_s17, %s22_s17   ;;  %s1560_s16 = sphi %s1610_s16, %s2052_s16   ;;  %s1556_s15 = sphi %s1608_s15, %s2051_s15   ;;  %s1552_s14 = sphi %s1606_s14, %s2055_s14   ;;  %s1548_s13 = sphi %s1604_s13, %s2054_s13   ;;  %s1544_s12 = sphi %s1602_s12, %s2053_s12  }
   0xc   : > { %s1039_s19 = sadd.s32 4294967294, %s1564_s17   ;;  %s34_s20 = sadd.s32 1, %s1560_s16 }
   0xd   : > { %s41_s21 = sadd.s32 1, %s1552_s14  ;;  %p36_p0 = scmp.ge.s32.totalorder %s34_s20, 2 }
   0xe   : > { %p48_p1 = scmp.ne.s32.totalorder %s1552_s14, %s1548_s13  ;;  %p49_p2 = scmp.eq.s32.totalorder %s1564_s17, 0 }
   0xf   : > { %p54_p3 = scmp.ne.s32.totalorder %s1548_s13, %s1544_s12  ;;  %s2057_s20 = smov (%p36_p0, %s34_s20), 0 }
  0x10   : > { %2032 = sst [smem:[#allocation14_spill]] %s2057_s20  ;;  %p1645_p4 = por %p49_p2, %p48_p1 }
  0x11   : > { %p55_p5 = scmp.eq.s32.totalorder %s1633_s18, 0  ;;  %s38_s23 = ssub.s32 %s1560_s16, %s2057_s20 }
  0x12   : > { %p134_p6 = scmp.eq.s32.totalorder %s1633_s18, 1  ;;  %p39_p7 = scmp.eq.s32.totalorder %s38_s23, 0 }
  0x13   : > { %p1653_p8 = por %p55_p5, %p54_p3  ;;  %p140_p10 = scmp.eq.s32.totalorder %s1039_s19, 1 }
  0x14   : > { %p1657_p9 = por %p134_p6, %p48_p1  ;;  %p1321_p13 = scmp.lt.s32.totalorder %s1564_s17, 2 }
  0x15   : > { %s2034_s24 = scalar_select %p1653_p8, 1, 0 }
  0x16   : > { %s2035_s25 = scalar_select %p1657_p9, 1, 0 }
  0x17   : > { %s1662_s26 = scalar_select %p39_p7, %s1552_s14, %s41_s21  }
  0x18   : > { %p1664_p11 = por %p140_p10, %p54_p3  ;;  %s1671_s28 = sand.u32 1, %s1552_s14  }
  0x19   : > { %2036 = sst [smem:[#allocation15_spill]] %s1662_s26  ;;  %s181_s29 = sand.u32 1, %s1564_s17  }
  0x1a   : > { %s2037_s27 = scalar_select %p1664_p11, 1, 0 }
  0x1b   : > { %s2023_s30 = sshll.u32 %s1671_s28, 2  ;;  %p1677_p0 = pnand %p1321_p13, %p1645_p4 }
  0x1c   : > { %s1046_s5 = sshll.u32 %s1560_s16, 6  ;;  %s2039_s1 = sld [smem:[#allocation17_spill]] }
  0x1d   : > { %s2038_s4 = scalar_select %p1677_p0, 1, 0 }
  0x1e   : > { %s185_s9 = scalar_lea.vmem [#allocation6], %s2023_s30  ;;  %s1694_s21 = scalar_lea.hbm %s2021_s2, %s1046_s5 }
  0x1f   : > { %s192_s10 = sshll.u32 %s185_s9, 4  ;;  %s1696_s22 = scalar_lea.sflag [#allocation7], %s181_s29  ;;  %s1689_s10 = int_to_ptr.vmem [resolvable:$true] %s192_s10 }
  0x20   : > { %p1702_p2 = pneg %p1677_p0 }
  0x22   : > { %s1685_s8 = scalar_lea.hbm %s2039_s1, %s1046_s5  ;;  %s1393_s30 = scalar_lea.hbm %s2039_s1, 128 }
  0x23   : > { %s1388_s23 = scalar_lea.hbm %s1685_s8, 64  ;;  %p1394_p5 = scmp.lt.u32.totalorder %s1685_s8, %s2039_s1 }
  0x24   : > { %p1389_p1 = scmp.ne.s32.totalorder %s1685_s8, %s1388_s23  ;;  %p1395_p6 = scmp.lt.u32.totalorder %s1393_s30, %s1388_s23 }
  0x25   : > { %p1397_p10 = scmp.lt.u32.totalorder %s1388_s23, %s1685_s8 }
  0x26   : > { %p1391_p3 = pnand %p1702_p2, %p1389_p1  ;;  %p1396_p7 = por %p1395_p6, %p1394_p5 }
  0x28   : > { %p1392_p4 = pneg %p1391_p3  ;;  %p1398_p13 = por %p1397_p10, %p1396_p7 }
  0x2a   : > { %p1399_p12 = pnand %p1398_p13, %p1392_p4 }
  0x2c   : > { %1402 = shalt.err (!%p1399_p12)
}
  0x2d   : > { %s1403_s29 = scalar_lea.vmem %s1689_s10, 64  ;;  %s1566_s19 = smov [#allocation6]  }
  0x2e   : > { %p1404_p1 = scmp.ne.s32.totalorder %s1689_s10, %s1403_s29  ;;  %s1408_s7 = sshll.u32 %s1566_s19, 4  ;;  %s1409_s7 = int_to_ptr.vmem [resolvable:$false] %s1408_s7 }
  0x2f   : > { %s1410_s9 = scalar_lea.vmem %s1409_s7, 128  ;;  %p1411_p9 = scmp.lt.s32.totalorder %s1689_s10, %s1409_s7 }
  0x30   : > { %p1406_p3 = pnand %p1404_p1, %p1702_p2  ;;  %p1412_p8 = scmp.lt.s32.totalorder %s1410_s9, %s1403_s29 }
  0x32   : > { %p1407_p11 = pneg %p1406_p3  ;;  %p1413_p5 = por %p1412_p8, %p1411_p9 }
  0x34   : > { %p1414_p6 = pnand %p1413_p5, %p1407_p11 }
  0x36   : > { %1417 = shalt.err (!%p1414_p6)
}
  0x37   : > { %1313 = dma.hbm_to_vmem [thread:$0]  (!%p1677_p0), %s1685_s8, 64, %s1689_s10, %s1696_s22  }
  0x38   : > { %p1049_p12 = scmp.ge.s32.totalorder %s1564_s17, 1  ;;  %p216_p4 = scmp.lt.s32.totalorder %s1564_s17, 3 }
  0x39   : > { %s1042_s23 = sshll.u32 %s1671_s28, 6  ;;  %s1058_s11 = sshll.u32 %s1560_s16, 10 }
  0x3a   : > { %p1728_p7 = pnand %p1049_p12, %p216_p4  ;;  %s2042_s0 = sld [smem:[#allocation16_spill]] }
  0x3b   : > { %s164_s7 = scalar_lea.vmem [#allocation3], %s1042_s23  ;;  %s161_s8 = scalar_lea.sflag [#allocation4], %s1671_s28 }
  0x3c   : > { %s2041_s30 = scalar_select %p1728_p7, 1, 0 }
  0x3d   : > { %s171_s9 = sshll.u32 %s164_s7, 4  ;;  %s1739_s9 = int_to_ptr.vmem [resolvable:$true] %s171_s9 }
  0x40   : > { %s1737_s19 = scalar_lea.hbm %s2042_s0, %s1058_s11  ;;  %s1423_s5 = scalar_lea.hbm %s2042_s0, 2048 }
  0x41   : > { %s1418_s10 = scalar_lea.hbm %s1737_s19, 1024  ;;  %p1424_p10 = scmp.lt.u32.totalorder %s1737_s19, %s2042_s0 }
  0x42   : > { %p1419_p8 = scmp.ne.s32.totalorder %s1737_s19, %s1418_s10  ;;  %p1425_p13 = scmp.lt.u32.totalorder %s1423_s5, %s1418_s10 }
  0x43   : > { %p1427_p3 = scmp.lt.u32.totalorder %s1418_s10, %s1737_s19 }
  0x44   : > { %p1421_p9 = pnand %p1419_p8, %p1702_p2  ;;  %p1426_p1 = por %p1425_p13, %p1424_p10 }
  0x46   : > { %p1422_p11 = pneg %p1421_p9  ;;  %p1428_p5 = por %p1427_p3, %p1426_p1 }
  0x48   : > { %p1429_p6 = pnand %p1428_p5, %p1422_p11 }
  0x4a   : > { %1432 = shalt.err (!%p1429_p6)
}
  0x4b   : > { %s1433_s23 = scalar_lea.vmem %s1739_s9, 1024  ;;  %s1567_s1 = smov [#allocation3]  }
  0x4c   : > { %p1434_p12 = scmp.ne.s32.totalorder %s1739_s9, %s1433_s23  ;;  %s1438_s20 = sshll.u32 %s1567_s1, 4  ;;  %s1439_s20 = int_to_ptr.vmem [resolvable:$false] %s1438_s20 }
  0x4d   : > { %s1440_s7 = scalar_lea.vmem %s1439_s20, 2048  ;;  %p1441_p9 = scmp.lt.s32.totalorder %s1739_s9, %s1439_s20 }
  0x4e   : > { %p1436_p4 = pnand %p1434_p12, %p1702_p2  ;;  %p1442_p7 = scmp.lt.s32.totalorder %s1440_s7, %s1433_s23 }
  0x50   : > { %p1437_p8 = pneg %p1436_p4  ;;  %p1443_p10 = por %p1442_p7, %p1441_p9 }
  0x52   : > { %p1444_p13 = pnand %p1443_p10, %p1437_p8 }
  0x54   : > { %1447 = shalt.err (!%p1444_p13)
}
  0x55   : > { %s1568_s10 = smov 128   ;;  %s1569_s5 = smov 8  }
  0x56   : > { %1310 = dma.hbm_to_vmem [thread:$0]  (!%p1677_p0), %s1737_s19, 1024, %s1739_s9, %s161_s8, %s1568_s10, %s1568_s10, %s1569_s5  }
  0x57   : > { %s2043_s11 = sshll.u32 %s1671_s28, 2  ;;  %s1448_s1 = scalar_lea.hbm %s1694_s21, 64 }
  0x58   : > { %s203_s29 = scalar_lea.vmem [#allocation8], %s2043_s11  ;;  %p1449_p7 = scmp.ne.s32.totalorder %s1694_s21, %s1448_s1 }
  0x59   : > { %s211_s23 = sshll.u32 %s203_s29, 4  ;;  %s1453_s0 = scalar_lea.hbm %s2021_s2, 128  ;;  %s212_s23 = int_to_ptr.vmem [resolvable:$true] %s211_s23 }
  0x5a   : > { %p1451_p11 = pnand %p1449_p7, %p1702_p2  ;;  %p1454_p3 = scmp.lt.u32.totalorder %s1694_s21, %s2021_s2 }
  0x5b   : > { %p1455_p5 = scmp.lt.u32.totalorder %s1453_s0, %s1448_s1  ;;  %p1457_p12 = scmp.lt.u32.totalorder %s1448_s1, %s1694_s21 }
  0x5c   : > { %p1452_p1 = pneg %p1451_p11 }
  0x5d   : > { %p1456_p6 = por %p1455_p5, %p1454_p3 }
  0x5f   : > { %p1458_p4 = por %p1457_p12, %p1456_p6 }
  0x61   : > { %p1459_p8 = pnand %p1458_p4, %p1452_p1 }
  0x63   : > { %1462 = shalt.err (!%p1459_p8)
}
  0x64   : > { %s1463_s28 = scalar_lea.vmem %s212_s23, 64  ;;  %s1570_s19 = smov [#allocation8]  }
  0x65   : > { %p1464_p9 = scmp.ne.s32.totalorder %s212_s23, %s1463_s28  ;;  %s1468_s9 = sshll.u32 %s1570_s19, 4  ;;  %s1469_s9 = int_to_ptr.vmem [resolvable:$false] %s1468_s9 }
  0x66   : > { %s1470_s8 = scalar_lea.vmem %s1469_s9, 128  ;;  %p1471_p7 = scmp.lt.s32.totalorder %s212_s23, %s1469_s9 }
  0x67   : > { %p1466_p10 = pnand %p1464_p9, %p1702_p2  ;;  %p1472_p11 = scmp.lt.s32.totalorder %s1470_s8, %s1463_s28 }
  0x69   : > { %p1467_p13 = pneg %p1466_p10  ;;  %p1473_p0 = por %p1472_p11, %p1471_p7 }
  0x6b   : > { %p1474_p3 = pnand %p1473_p0, %p1467_p13 }
  0x6d   : > { %1477 = shalt.err (!%p1474_p3)
}
  0x6e   : > { %p2044_p5 = scmp.ne.s32.totalorder %s2038_s4, 0  ;;  %p2045_p1 = scmp.ne.s32.totalorder %s2041_s30, 0 }
  0x6f   : > { %s1788_s0 = sand.u32 (!%p2045_p1), 1, %s1548_s13   ;;  %p2046_p0 = scmp.ne.s32.totalorder (!%p2045_p1), %s2034_s24, 0 }
  0x70   : > { %1316 = dma.hbm_to_vmem [thread:$0]  (!%p2044_p5), %s1694_s21, 64, %s212_s23, %s1696_s22  }
  0x71   : > { %220 = sbr.rel (%p2045_p1) target bundleno = 524 (0x20c), region = 32  ;;  %s1050_s16 = sshll.u32 (!%p2045_p1), %s1788_s0, 6 }
  0x72   : > { %s223_s26 = scalar_lea.sflag (!%p2045_p1), [#allocation4], %s1788_s0  ;;  %s1792_s6 = scalar_lea.vmem (!%p2045_p1), [#allocation3], %s1050_s16 }
  0x78   : > { %1531 = dma.done.wait (%p2046_p0), %s223_s26, 1024  }
  0x79   : > { %1533 = vsyncadd (%p2046_p0), %s223_s26, 4294966272  ;;  %s231_s4 = sand.u32 1, %s1633_s18   ;;  %s1800_s21 = sshll.u32 %s1788_s0, 2 }
  0x7a   : > { %s232_s22 = scalar_lea.sflag [#allocation7], %s231_s4  ;;  %s235_s30 = scalar_lea.vmem [#allocation6], %s1800_s21 }
  0x7b   : > { %1535 = dma.done.wait (%p2046_p0), %s232_s22, 128  }
  0x7c   : > { %1537 = vsyncadd (%p2046_p0), %s232_s22, 4294967168  ;;  %vm281_vm0 = vcmask 31744   ;;  %v1571_v0 = vmov 0.0|0.0   ;;  %v1572_v1 = vmov 0.0   ;;  %vm1573_vm1 = vmmov 0   ;;  %v286_v4 = vld [vmem:[%s1792_s6] sm:$0xff] }
  0x7d   : > { %1227 = vmatprep.subr.bf16.mxu0 %v1571_v0  ;;  %1239 = vmatprep.subr.bf16.mxu1 %v1571_v0  ;;  %282 = vst.msk [vmem:[#allocation2] sm:$0xff] %vm281_vm0, %v1572_v1  ;;  %v1574_v2 = vmov 0   ;;  %v1575_v3 = vmov 2   ;;  %v287_v5 = vld [vmem:[%s1792_s6 + $0x8] sm:$0xff]  ;;  %v288_v6 = vld [vmem:[%s1792_s6 + $0x10] sm:$0xff]  ;;  %vm284_vm2 = vcmask 1043456  }
  0x7e   : > { %1129 = vmatprep.mubr.msk.f32.mxu0 %vm1573_vm1, %v1572_v1  ;;  %1148 = vmatprep.mubr.msk.f32.mxu1 %vm1573_vm1, %v1572_v1  ;;  %vm306_vm3 = vcmask 523264   ;;  %v311_v7 = vand.u32 4294901760, %v286_v4  ;;  %v314_v8 = vand.u32 4294901760, %v287_v5  ;;  %v289_v9 = vld [vmem:[%s1792_s6 + $0x18] sm:$0xff]  ;;  %v317_v10 = vand.u32 4294901760, %v288_v6  ;;  %v290_v11 = vld [vmem:[%s1792_s6 + $0x20] sm:$0xff] }
  0x7f   : > { %1383 = vset.pattern.permute.xlu0 %v1574_v2  ;;  %1385 = vset.pattern.permute.xlu1 %v1575_v3  ;;  %v291_v12 = vld [vmem:[%s1792_s6 + $0x28] sm:$0xff]  ;;  %v320_v13 = vand.u32 4294901760, %v289_v9  ;;  %v323_v14 = vand.u32 4294901760, %v290_v11  ;;  %v292_v16 = vld [vmem:[%s1792_s6 + $0x30] sm:$0xff]  ;;  %v293_v22 = vld [vmem:[%s1792_s6 + $0x38] sm:$0xff]  ;;  %s244_s18 = scalar_lea.vmem [#allocation8], %s1800_s21 }
  0x80   : > { %v326_v15 = vand.u32 4294901760, %v291_v12  ;;  %v1822_v18 = vpack.c.bf16 %v314_v8, %v311_v7  ;;  %v1824_v19 = vsub.f32 %v286_v4, %v311_v7  ;;  %v1826_v20 = vsub.f32 %v287_v5, %v314_v8  ;;  %v283_v23 = vld [vmem:[%s244_s18] sm:$0xf]  ;;  %s1578_s24 = smov 65   ;;  %s1579_s10 = smov 67  }
  0x81   : > { %v1828_v21 = vsub.f32 %v288_v6, %v317_v10  ;;  %v1832_v24 = vpack.c.bf16 %v320_v13, %v317_v10  ;;  %v1834_v25 = vsub.f32 %v289_v9, %v320_v13  ;;  %v1836_v26 = vsub.f32 %v290_v11, %v323_v14  ;;  %s1055_s5 = sshll.u32 %s1556_s15, 6  ;;  %s276_s11 = scalar_lea.vmem [#allocation9], %s1800_s21 }
  0x82   : > { %1229 = vmatpush3.bf16.msra.mxu0 %v1822_v18  ;;  %v1839_v27 = vsub.f32 %v291_v12, %v326_v15  ;;  %v396_v28 = vand.u32 4294901760, %v1824_v19  ;;  %v403_v29 = vand.u32 4294901760, %v1826_v20  ;;  %v329_v30 = vand.u32 4294901760, %v292_v16  ;;  %s915_s29 = sshll.u32 %s276_s11, 4  ;;  %s1968_s20 = scalar_lea.hbm %s2022_s3, %s1055_s5  ;;  %s1970_s29 = int_to_ptr.vmem [resolvable:$true] %s915_s29 }
  0x83   : > { %1230 = vmatprep.subr.bf16.mxu0 %v1571_v0  ;;  %v332_v31 = vand.u32 4294901760, %v293_v22  ;;  %v410_v32 = vand.u32 4294901760, %v1828_v21  ;;  %v417_v33 = vand.u32 4294901760, %v1834_v25  ;;  %v1847_v34 = vsel %vm284_vm2, %v283_v23, 0.0  ;;  %s1580_s7 = smov 69   ;;  %s901_s15 = scalar_lea.sflag [#allocation5], %s1788_s0 }
  0x84   : > { %v294_v17 = vld [vmem:[#allocation2] sm:$0xff]  ;;  %v397_v35 = vsub.f32 %v1824_v19, %v396_v28  ;;  %v404_v36 = vsub.f32 %v1826_v20, %v403_v29  ;;  %v1855_v37 = vsub.f32 %v292_v16, %v329_v30  ;;  %v308_v38 = vsel %vm306_vm3, %v1847_v34, 0  ;;  %s1478_s28 = scalar_lea.vmem %s1970_s29, 64  ;;  %p2047_p6 = scmp.ne.s32.totalorder %s2035_s25, 0 }
  0x85   : > { %298 = vperm.xlu0 %1383, %v294_v17   ;;  %858 = vperm.xlu1 %1385, %v294_v17   ;;  %v1576_v39 = vmov 1   ;;  %v1859_v40 = vpack.c.bf16 %v326_v15, %v323_v14  ;;  %v1861_v41 = vsub.f32 %v293_v22, %v332_v31  ;;  %v411_v42 = vsub.f32 %v1828_v21, %v410_v32  ;;  %p1479_p2 = scmp.ne.s32.totalorder %s1970_s29, %s1478_s28  ;;  %s1581_s19 = smov [#allocation9]  }
  0x86   : > { %v418_v43 = vsub.f32 %v1834_v25, %v417_v33  ;;  %1232 = vmatpush3.bf16.msra.mxu0 %v1832_v24  ;;  %v398_v44 = vand.u32 4294901760, %v397_v35  ;;  %v405_v45 = vand.u32 4294901760, %v404_v36  ;;  %v1870_v46 = vand.u32 4294901760, %v308_v38  ;;  %s1482_s9 = sshll.u32 %s1581_s19, 4  ;;  %s1483_s9 = int_to_ptr.vmem [resolvable:$false] %s1482_s9 }
  0x87   : > { %v424_v47 = vand.u32 4294901760, %v1836_v26  ;;  %v1577_v48 = vmov 3   ;;  %1233 = vmatprep.subr.bf16.mxu0 %v1571_v0  ;;  %v412_v49 = vand.u32 4294901760, %v411_v42  ;;  %v431_v51 = vand.u32 4294901760, %v1839_v27  ;;  %p1480_p12 = pnand %p1479_p2, %p2047_p6  ;;  %s1484_s8 = scalar_lea.vmem %s1483_s9, 128 }
  0x88   : > { %v419_v50 = vand.u32 4294901760, %v418_v43  ;;  %v1240_v52 = vpack.c.bf16 %v405_v45, %v398_v44  ;;  %v1876_v53 = vsub.f32 %v308_v38, %v1870_v46  ;;  %v438_v55 = vand.u32 4294901760, %v1855_v37  ;;  %p1485_p8 = scmp.lt.s32.totalorder %s1970_s29, %s1483_s9  ;;  %p1486_p9 = scmp.lt.s32.totalorder %s1484_s8, %s1478_s28 }
  0x89   : > { %1384 = vset.pattern.permute.xlu0 %v1576_v39  ;;  %1386 = vset.pattern.permute.xlu1 %v1577_v48  ;;  %v425_v54 = vsub.f32 %v1836_v26, %v424_v47  ;;  %v1882_v56 = vpack.c.bf16 %v332_v31, %v329_v30  ;;  %v432_v57 = vsub.f32 %v1839_v27, %v431_v51  ;;  %v445_v58 = vand.u32 4294901760, %v1861_v41  ;;  %p1481_p4 = pneg %p1480_p12 }
  0x8a   : > { %848 = vperm.xlu0 %1384, %v294_v17   ;;  %868 = vperm.xlu1 %1386, %v294_v17   ;;  %v1243_v59 = vpack.c.bf16 %v419_v50, %v412_v49  ;;  %v385_v60 = vand.u32 4294901760, %v1876_v53  ;;  %v439_v62 = vsub.f32 %v1855_v37, %v438_v55  ;;  %v1252_v4 = vpack.c.bf16 %v1826_v20, %v1824_v19  ;;  %v295_v19 = vld [vmem:[%s235_s30] sm:$0xf]  ;;  %p1487_p10 = por %p1486_p9, %p1485_p8 }
  0x8b   : > { %1235 = vmatpush3.bf16.msra.mxu0 %v1859_v40  ;;  %1241 = vmatpush3.bf16.msra.mxu1 %v1240_v52  ;;  %v426_v61 = vand.u32 4294901760, %v425_v54  ;;  %v433_v63 = vand.u32 4294901760, %v432_v57  ;;  %v446_v2 = vsub.f32 %v1861_v41, %v445_v58  ;;  %v1255_v10 = vpack.c.bf16 %v1834_v25, %v1828_v21 }
  0x8c   : > { %1236 = vmatprep.subr.bf16.mxu0 %v1571_v0  ;;  %1242 = vmatprep.subr.bf16.mxu1 %v1571_v0  ;;  %v386_v3 = vsub.f32 %v1876_v53, %v385_v60  ;;  %v440_v7 = vand.u32 4294901760, %v439_v62  ;;  %v1258_v11 = vpack.c.bf16 %v1839_v27, %v1836_v26  ;;  %v1261_v12 = vpack.c.bf16 %v1861_v41, %v1855_v37  ;;  %p1488_p13 = pnand %p1487_p10, %p1481_p4 }
  0x8d   : > { %v1246_v6 = vpack.c.bf16 %v433_v63, %v426_v61  ;;  %v447_v8 = vand.u32 4294901760, %v446_v2  ;;  %v1276_v13 = vpack.c.bf16 %v403_v29, %v396_v28  ;;  %v1279_v14 = vpack.c.bf16 %v417_v33, %v410_v32 }
  0x8e   : > { %1387 = vset.pattern.permute.xlu0 %v1577_v48  ;;  %v387_v5 = vand.u32 4294901760, %v386_v3  ;;  %v1282_v15 = vpack.c.bf16 %v431_v51, %v424_v47  ;;  %v1285_v16 = vpack.c.bf16 %v445_v58, %v438_v55  ;;  %879 = vrot.lane.b32.xlu1 %v1847_v34, %s1578_s24  ;;  %vm877_vm4 = vcmask 519168  }
  0x8f   : > { %1238 = vmatpush3.bf16.msra.mxu0 %v1882_v56  ;;  %1244 = vmatpush3.bf16.msra.mxu1 %v1243_v59  ;;  %v1249_v9 = vpack.c.bf16 %v447_v8, %v440_v7 }
  0x90   : > { %1245 = vmatprep.subr.bf16.mxu1 %v1571_v0  ;;  %1251 = vmatprep.subr.bf16.mxu0 %v1571_v0 }
  0x91   : > { %882 = vrot.lane.b32.xlu0 %v1847_v34, %s1579_s10 }
  0x92   : > { %1130 = vmatmul.mubr.f32.vlgmr.msra.gmra.mrb[0].mxu0 %v387_v5 }
  0x93   : > { %1247 = vmatpush3.bf16.msra.mxu1 %v1246_v6  ;;  %1253 = vmatpush3.bf16.msra.mxu0 %v1252_v4 }
  0x94   : > { %1248 = vmatprep.subr.bf16.mxu1 %v1571_v0  ;;  %1254 = vmatprep.subr.bf16.mxu0 %v1571_v0 }
  0x95   : > { %1167 = vmatprep.mubr.msk.f32.mxu0 %vm1573_vm1, %v1572_v1 }
  0x97   : > { %1250 = vmatpush3.bf16.msra.mxu1 %v1249_v9  ;;  %1256 = vmatpush3.bf16.msra.mxu0 %v1255_v10 }
  0x98   : > { %1257 = vmatprep.subr.bf16.mxu0 %v1571_v0  ;;  %1263 = vmatprep.subr.bf16.mxu1 %v1571_v0 }
  0x9a   : > { %1149 = vmatmul.mubr.f32.vlgmr.msra.gmra.mrb[0].mxu1 %v1870_v46 }
  0x9b   : > { %1259 = vmatpush3.bf16.msra.mxu0 %v1258_v11  ;;  %1265 = vmatpush3.bf16.msra.mxu1 %v1822_v18 }
  0x9c   : > { %1260 = vmatprep.subr.bf16.mxu0 %v1571_v0  ;;  %1266 = vmatprep.subr.bf16.mxu1 %v1571_v0 }
  0x9d   : > { %1186 = vmatprep.mubr.msk.f32.mxu1 %vm1573_vm1, %v1572_v1 }
  0x9f   : > { %1262 = vmatpush3.bf16.msra.mxu0 %v1261_v12  ;;  %1268 = vmatpush3.bf16.msra.mxu1 %v1832_v24 }
  0xa0   : > { %1269 = vmatprep.subr.bf16.mxu1 %v1571_v0  ;;  %1275 = vmatprep.subr.bf16.mxu0 %v1571_v0 }
  0xa2   : > { %1168 = vmatmul.mubr.f32.vlgmr.msra.gmra.mrb[2].mxu0 %v1876_v53 }
  0xa3   : > { %1271 = vmatpush3.bf16.msra.mxu1 %v1859_v40  ;;  %1277 = vmatpush3.bf16.msra.mxu0 %v1276_v13 }
  0xa4   : > { %1272 = vmatprep.subr.bf16.mxu1 %v1571_v0  ;;  %1278 = vmatprep.subr.bf16.mxu0 %v1571_v0 }
  0xa5   : > { %1205 = vmatprep.mubr.msk.f32.mxu0 %vm1573_vm1, %v1572_v1 }
  0xa7   : > { %1274 = vmatpush3.bf16.msra.mxu1 %v1882_v56  ;;  %1280 = vmatpush3.bf16.msra.mxu0 %v1279_v14 }
  0xa8   : > { %1281 = vmatprep.subr.bf16.mxu0 %v1571_v0  ;;  %1287 = vmatprep.subr.bf16.mxu1 %v1571_v0 }
  0xaa   : > { %1187 = vmatmul.mubr.f32.vlgmr.msra.gmra.mrb[2].mxu1 %v385_v60 }
  0xab   : > { %1283 = vmatpush3.bf16.msra.mxu0 %v1282_v15  ;;  %1289 = vmatpush3.bf16.msra.mxu1 %v1822_v18 }
  0xac   : > { %1284 = vmatprep.subr.bf16.mxu0 %v1571_v0  ;;  %1290 = vmatprep.subr.bf16.mxu1 %v1571_v0 }
  0xad   : > { %1224 = vmatprep.mubr.msk.f32.mxu1 %vm1573_vm1, %v1572_v1  ;;  %v301_v1 = vlaneseq }
  0xaf   : > { %1286 = vmatpush3.bf16.msra.mxu0 %v1285_v16  ;;  %1292 = vmatpush3.bf16.msra.mxu1 %v1832_v24  ;;  %v302_v17 = vshrl.u32 %v301_v1, 7 }
  0xb0   : > { %1293 = vmatprep.subr.bf16.mxu1 %v1571_v0 }
  0xb1   : > { %v303_v18 = vsub.s32 0, %v302_v17  ;;  %v853_v34 = vsub.s32 1, %v302_v17  ;;  %v863_v39 = vsub.s32 2, %v302_v17  ;;  %v873_v41 = vsub.s32 3, %v302_v17 }
  0xb2   : > { %1206 = vmatmul.mubr.f32.vlgmr.msra.gmra.mrb[4].mxu0 %v1870_v46 }
  0xb3   : > { %1295 = vmatpush3.bf16.msra.mxu1 %v1859_v40  ;;  %v304_v20 = vrot.slane %v295_v19, %v303_v18  ;;  %v854_v40 = vrot.slane %v295_v19, %v853_v34  ;;  %v864_v43 = vrot.slane %v295_v19, %v863_v39  ;;  %v874_v45 = vrot.slane %v295_v19, %v873_v41 }
  0xb4   : > { %1296 = vmatprep.subr.bf16.mxu1 %v1571_v0 }
  0xb7   : > { %1298 = vmatpush3.bf16.msra.mxu1 %v1882_v56 }
  0xba   : > { %1225 = vmatmul.mubr.f32.vlgmr.msra.gmra.mrb[4].mxu1 %v1870_v46 }
 0x104   : > { %v299_v21 = vpop.permute.xlu0 %298  ;;  %v859_v38 = vpop.permute.xlu1 %858 }
 0x105   : > { %v305_v0 = vmul.f32 %v304_v20, %v299_v21  ;;  %v865_v50 = vmul.f32 %v864_v43, %v859_v38 }
 0x109   : > { %v849_v42 = vpop.permute.xlu0 %848  ;;  %v869_v47 = vpop.permute.xlu1 %868 }
 0x10a   : > { %v855_v44 = vmul.f32 %v854_v40, %v849_v42  ;;  %v875_v52 = vmul.f32 %v874_v45, %v869_v47 }
 0x165   : > { %v389_v22 = vpop.f32.mrb[0].mxu0 }
 0x166   : > { %v1131_v23 = vpop.f32.mrb[1].mxu0  ;;  %v390_v24 = vadd.f32 %v389_v22, %v305_v0 }
 0x16d   : > { %v500_v25 = vpop.f32.mrb[0].mxu1 }
 0x16e   : > { %v501_v26 = vadd.f32 %v500_v25, %v390_v24  ;;  %v1150_v27 = vpop.f32.mrb[1].mxu1 }
 0x175   : > { %v588_v28 = vpop.f32.mrb[2].mxu0 }
 0x176   : > { %v589_v29 = vadd.f32 %v588_v28, %v501_v26  ;;  %v1169_v30 = vpop.f32.mrb[3].mxu0 }
 0x17d   : > { %v669_v31 = vpop.f32.mrb[2].mxu1 }
 0x17e   : > { %v670_v32 = vadd.f32 %v669_v31, %v589_v29  ;;  %v1188_v33 = vpop.f32.mrb[3].mxu1 }
 0x185   : > { %v764_v35 = vpop.f32.mrb[4].mxu0 }
 0x186   : > { %v765_v36 = vadd.f32 %v764_v35, %v670_v32  ;;  %v1207_v37 = vpop.f32.mrb[5].mxu0 }
 0x18d   : > { %v843_v46 = vpop.f32.mrb[4].mxu1 }
 0x18e   : > { %v844_v48 = vadd.f32 %v843_v46, %v765_v36  ;;  %v1226_v49 = vpop.f32.mrb[5].mxu1 }
 0x190   : > { %v856_v51 = vadd.f32 %v855_v44, %v844_v48 }
 0x192   : > { %v866_v53 = vadd.f32 %v865_v50, %v856_v51 }
 0x194   : > { %v876_v54 = vadd.f32 %v875_v52, %v866_v53 }
 0x196   : > { %889 = vrot.lane.b32.xlu0 %v876_v54, %s1580_s7  ;;  %886 = vrot.lane.b32.xlu1 %v876_v54, %s1579_s10  ;;  %878 = vst.msk [vmem:[%s276_s11] sm:$0xf] %vm877_vm4, %v876_v54 }
 0x197   : > { %1491 = shalt.err (!%p1488_p13)
}
 0x198   : > { %s1492_s0 = scalar_lea.hbm %s1968_s20, 64  ;;  %s1496_s6 = scalar_lea.hbm %s2022_s3, 128 }
 0x199   : > { %p1493_p7 = scmp.ne.s32.totalorder %s1968_s20, %s1492_s0  ;;  %p1497_p5 = scmp.lt.u32.totalorder %s1968_s20, %s2022_s3 }
 0x19a   : > { %p1498_p1 = scmp.lt.u32.totalorder %s1496_s6, %s1492_s0  ;;  %p1500_p2 = scmp.lt.u32.totalorder %s1492_s0, %s1968_s20 }
 0x19b   : > { %p1494_p11 = pnand %p1493_p7, %p2047_p6 }
 0x19c   : > { %p1499_p0 = por %p1498_p1, %p1497_p5 }
 0x19d   : > { %p1495_p3 = pneg %p1494_p11 }
 0x19e   : > { %p1501_p12 = por %p1500_p2, %p1499_p0 }
 0x1a0   : > { %p1502_p4 = pnand %p1501_p12, %p1495_p3 }
 0x1a2   : > { %1505 = shalt.err (!%p1502_p4)
}
 0x1a3   : > { %1305 = dma.vmem_to_hbm [thread:$0]  (%p2047_p6), %s1970_s29, 64, %s1968_s20, %s901_s15   ;;  %v880_v55 = vpop.permute.xlu1 %879  ;;  %v883_v56 = vpop.permute.xlu0 %882  ;;  %vm892_vm5 = vcmask 7168   ;;  %vm894_vm6 = vcmask 15360   ;;  %vm896_vm7 = vcmask 23552  }
 0x1a4   : > { %v893_v57 = vsel %vm892_vm5, %v880_v55, %v883_v56 }
 0x208   : > { %v887_v58 = vpop.permute.xlu1 %886  ;;  %v890_v59 = vpop.permute.xlu0 %889 }
 0x209   : > { %v895_v60 = vsel %vm894_vm6, %v893_v57, %v887_v58 }
 0x20a   : > { %v897_v61 = vsel %vm896_vm7, %v895_v60, %v890_v59 }
 0x20b   : > { %899 = vst.msk [vmem:[#allocation2] sm:$0xff] %vm281_vm0, %v897_v61 }
 0x20c PF: > { %s927_s25 = sand.u32 1, %s1544_s12   ;;  %p2048_p8 = scmp.ne.s32.totalorder %s2037_s27, 0 }
 0x20d   : > { %p2049_p9 = scmp.ge.s32.totalorder %s1564_s17, 2  ;;  %s928_s22 = scalar_lea.sflag [#allocation5], %s927_s25 }
 0x20f   : > { %p1318_p6 = pnand %p2049_p9, %p2048_p8 }
 0x211   : > { %1539 = dma.done.wait (!%p1318_p6), %s928_s22, 64  }
 0x212   : > { %1541 = vsyncadd (!%p1318_p6), %s928_s22, 4294967232  ;;  %s22_s17 = sadd.s32 1, %s1564_s17   ;;  %s2050_s30 = sld [smem:[#allocation15_spill]] }
 0x213   : > { %p19_p10 = scmp.ge.s32.totalorder %s22_s17, 4   ;;  %s2051_s15 = sld [smem:[#allocation13_spill]] }
 0x214   : > { %s2052_s16 = sld [smem:[#allocation14_spill]]  ;;  %s2053_s12 = smov %s1548_s13 }
 0x215   : > { %s2054_s13 = smov %s1552_s14  ;;  %21 = sbr.rel (!%p19_p10) target bundleno = 11 (0xb), region = 105 }
 0x218   : > { %s2055_s14 = smov %s2050_s30 }
 0x21c   :  { %933 = vsyncpa [#allocation4], 1 }
 0x21d   :  { %935 = vsyncpa [#allocation4 + $0x1], 1 }
 0x21e   :  { %936 = vsyncpa [#allocation7], 1 }
 0x21f   :  { %938 = vsyncpa [#allocation7 + $0x1], 1 }
 0x220   :  { %939 = vsyncpa [#allocation5], 1 }
 0x221   :  { %941 = vsyncpa [#allocation5 + $0x1], 1 }

</bundles_post_ra>
